<compile_context>
chip_gen: v5e
topology: v5e:2x2
jax: 0.10.0
libtpu: 0.0.40
codegen_flags: <defaults>
</compile_context>

<pallas_src>
import functools
import math

import jax
import jax.numpy as jnp
from jax.experimental import pallas as pl
from jax.experimental.pallas import tpu as pltpu


def _attention_kernel(x_q_ref, x_kv_ref, wq_ref, wkv_ref, wo_ref, o_ref,
                      *, num_heads, d_head, scale):
    # x_q_ref : (TQ, D)   query tile            (batch dim squeezed by BlockSpec)
    # x_kv_ref: (P,  D)   full sequence for K/V (batch dim squeezed)
    # wq_ref  : (D, H*dh)        pre-transposed, head-fused Q weight
    # wkv_ref : (D, 2*H*dh)      pre-transposed, head-fused [K | V] weight
    # wo_ref  : (H*dh, D)        pre-transposed output weight (W_O^T)
    # o_ref   : (TQ, D)
    x_q = x_q_ref[...]
    x_kv = x_kv_ref[...]
    hd = num_heads * d_head
    compute_dtype = x_q.dtype  # keep MXU operands in the input dtype (bf16-friendly)

    # Head-fused projections: two wide MXU GEMMs instead of 3*H narrow ones.
    # 1/sqrt(d_head) is folded into q once (a (TQ, H*dh) scale, not a (TQ, P) one).
    q_all = (jnp.dot(x_q, wq_ref[...], preferred_element_type=jnp.float32)
             * scale).astype(compute_dtype)                                   # (TQ, H*dh)
    kv = jnp.dot(x_kv, wkv_ref[...], preferred_element_type=jnp.float32)      # (P, 2*H*dh)
    k_all = kv[:, :hd].astype(compute_dtype)
    v_all = kv[:, hd:].astype(compute_dtype)

    z_parts = []
    for i in range(num_heads):  # num_heads is small & static -> unrolled
        lo, hi = i * d_head, (i + 1) * d_head
        q_i = q_all[:, lo:hi]                                                  # (TQ, dh)
        k_i = k_all[:, lo:hi]                                                  # (P,  dh)
        v_i = v_all[:, lo:hi]                                                  # (P,  dh)

        # scores[q, p] = sum_h q_i[q, h] * k_i[p, h]
        # contract on the existing last axes -> no materialized transpose of k.
        s = jax.lax.dot_general(q_i, k_i, (((1,), (1,)), ((), ())),
                                preferred_element_type=jnp.float32)            # (TQ, P) f32

        # Numerically-stable softmax with deferred normalization (stats stay f32).
        m = jnp.max(s, axis=-1, keepdims=True)
        e = jnp.exp(s - m)
        denom = jnp.sum(e, axis=-1, keepdims=True)                             # (TQ, 1)
        z_un = jnp.dot(e.astype(compute_dtype), v_i,
                       preferred_element_type=jnp.float32)                     # (TQ, dh)
        z_parts.append(z_un * pl.reciprocal(denom))

    # Collect per-head z into one (TQ, H*dh) slab; single head-fused output GEMM.
    z_flat = jnp.concatenate(z_parts, axis=-1)                                 # (TQ, H*dh)
    o_ref[...] = jnp.dot(z_flat.astype(compute_dtype), wo_ref[...],
                         preferred_element_type=jnp.float32).astype(o_ref.dtype)


def attention_pallas(x, w_k, w_q, w_v, w_o, *, q_tile=256):
    """x: (B, P, D); w_k/w_q/w_v: (H, dh, D); w_o: (D, H*dh) -> (B, P, D)."""
    B, P, D = x.shape
    H, dh, _ = w_q.shape
    hd = H * dh
    scale = 1.0 / math.sqrt(dh)

    # One-time wrapper-side head fusion + transposes (so the kernel never transposes):
    #   q_all  = x_q  @ wq_t   with wq_t  = reshape(W_Q, (H*dh, D))^T        -> (D, H*dh)
    #   [k|v]  = x_kv @ wkv_t  with wkv_t = [W_K^T | W_V^T]                  -> (D, 2*H*dh)
    #   out    = z_flat @ wo_t with wo_t  = W_O^T                            -> (H*dh, D)
    # Row order of the fused weights is (i*dh + h), matching 'b i q h -> b q (i h)'.
    wq_t = jnp.transpose(w_q.reshape(hd, D))
    wk_t = jnp.transpose(w_k.reshape(hd, D))
    wv_t = jnp.transpose(w_v.reshape(hd, D))
    wkv_t = jnp.concatenate([wk_t, wv_t], axis=-1)
    wo_t = jnp.transpose(w_o)

    # Query tiling: caps the live (TQ, P) score tile and exposes a parallel grid axis.
    TQ = P if P <= q_tile else q_tile
    assert P % TQ == 0, "seq length must be a multiple of the query tile"
    n_q = P // TQ

    kernel = functools.partial(_attention_kernel,
                               num_heads=H, d_head=dh, scale=scale)

    # Explicit VMEM budget from the real footprint (double-buffered I/O blocks +
    # resident fused weights + f32 temporaries), clamped to 64 MiB (safe on v7x).
    itemsize = x.dtype.itemsize
    w_bytes = 2 * (wq_t.size + wkv_t.size + wo_t.size) * itemsize
    blk_bytes = 2 * (TQ * D + P * D + TQ * D) * itemsize
    tmp_bytes = 4 * (TQ * P + 3 * TQ * hd + 2 * P * hd)
    vmem_limit = int(min(64 * 1024 * 1024,
                         max(32 * 1024 * 1024, 2 * (w_bytes + blk_bytes + tmp_bytes))))

    grid_spec = pltpu.PrefetchScalarGridSpec(
        num_scalar_prefetch=0,
        grid=(B, n_q),
        in_specs=[
            # Query tile of x; batch dim squeezed so the kernel sees a dense (TQ, D) slab.
            pl.BlockSpec((pl.Squeezed(), TQ, D), lambda b, qt: (b, qt, 0)),
            # Full-sequence x for K/V of this batch element.
            pl.BlockSpec((pl.Squeezed(), P, D), lambda b, qt: (b, 0, 0)),
            # Fused weights, fully resident (constant index map).
            pl.BlockSpec((D, hd), lambda b, qt: (0, 0)),
            pl.BlockSpec((D, 2 * hd), lambda b, qt: (0, 0)),
            pl.BlockSpec((hd, D), lambda b, qt: (0, 0)),
        ],
        out_specs=pl.BlockSpec((pl.Squeezed(), TQ, D), lambda b, qt: (b, qt, 0)),
    )

    return pl.pallas_call(
        kernel,
        out_shape=jax.ShapeDtypeStruct((B, P, D), x.dtype),
        grid_spec=grid_spec,
        compiler_params=pltpu.CompilerParams(
            # Every (batch, query-tile) grid point is independent -> shard across TCs.
            dimension_semantics=("parallel", "parallel"),
            vmem_limit_bytes=vmem_limit,
        ),
    )(x, x, wq_t, wkv_t, wo_t)


def attention_reference(x, w_k, w_q, w_v, w_o, d_head):
    """Pure-JAX transcription of the PyTorch forward, for verification."""
    k = jnp.einsum('ihd,bpd->biph', w_k, x)
    q = jnp.einsum('ihd,bpd->biph', w_q, x)
    v = jnp.einsum('ihd,bpd->biph', w_v, x)
    scores = jnp.einsum('biph,biqh->biqp', k, q) / math.sqrt(d_head)
    attn = jax.nn.softmax(scores, axis=-1)
    z = jnp.einsum('biph,biqp->biqh', v, attn)                 # (b, i, q, h)
    b, i, qlen, h = z.shape
    z_flat = jnp.transpose(z, (0, 2, 1, 3)).reshape(b, qlen, i * h)  # 'b i q h -> b q (i h)'
    return jnp.einsum('df,bqf->bqd', w_o, z_flat)


if __name__ == "__main__":
    # Small shapes consistent with the module.
    batch = 2
    num_ctx = 8        # seq length p
    d_model = 32
    num_heads = 2
    d_head = 8

    key = jax.random.PRNGKey(0)
    kx, kk, kq, kv, ko = jax.random.split(key, 5)

    # Deterministic parameter init mirroring torch.randn(...) / sqrt(d_model).
    w_k = jax.random.normal(kk, (num_heads, d_head, d_model), jnp.float32) / math.sqrt(d_model)
    w_q = jax.random.normal(kq, (num_heads, d_head, d_model), jnp.float32) / math.sqrt(d_model)
    w_v = jax.random.normal(kv, (num_heads, d_head, d_model), jnp.float32) / math.sqrt(d_model)
    w_o = jax.random.normal(ko, (d_model, num_heads * d_head), jnp.float32) / math.sqrt(d_model)

    x = jax.random.normal(kx, (batch, num_ctx, d_model), jnp.float32)

    out = attention_pallas(x, w_k, w_q, w_v, w_o)
    out = jax.block_until_ready(out)

    ref = attention_reference(x, w_k, w_q, w_v, w_o, d_head)
    assert out.shape == (batch, num_ctx, d_model)
    assert jnp.allclose(out, ref, atol=2e-4, rtol=2e-4), "mismatch vs reference"

    print("KERNEL_OK")
</pallas_src>

<mosaic_0001>
module attributes {stable_mosaic.version = 11 : i64} {
  func.func @_attention_kernel(%arg0: i32, %arg1: i32, %arg2: memref<1x8x32xf32, #tpu.memory_space<vmem>>, %arg3: memref<1x8x32xf32, #tpu.memory_space<vmem>>, %arg4: memref<32x16xf32, #tpu.memory_space<vmem>>, %arg5: memref<32x32xf32, #tpu.memory_space<vmem>>, %arg6: memref<16x32xf32, #tpu.memory_space<vmem>>, %arg7: memref<1x8x32xf32, #tpu.memory_space<vmem>>) attributes {dimension_semantics = [#tpu.dimension_semantics<parallel>, #tpu.dimension_semantics<parallel>], iteration_bounds = array<i64: 2, 1>, scalar_prefetch = 0 : i64, scratch_operands = 0 : i64, tpu.core_type = #tpu.core_type<tc>, window_params = [{transform_indices = @transform_0, window_bounds = array<i64: 1, 8, 32>}, {transform_indices = @transform_1, window_bounds = array<i64: 1, 8, 32>}, {pipeline_mode = #tpu.pipeline_mode<synchronous>, transform_indices = @transform_2, window_bounds = array<i64: 32, 16>}, {pipeline_mode = #tpu.pipeline_mode<synchronous>, transform_indices = @transform_3, window_bounds = array<i64: 32, 32>}, {pipeline_mode = #tpu.pipeline_mode<synchronous>, transform_indices = @transform_4, window_bounds = array<i64: 16, 32>}, {transform_indices = @transform_5, window_bounds = array<i64: 1, 8, 32>}]} {
    %c0 = arith.constant 0 : index
    %c0_0 = arith.constant 0 : index
    %c0_1 = arith.constant 0 : index
    %0 = vector.load %arg2[%c0, %c0_0, %c0_1] : memref<1x8x32xf32, #tpu.memory_space<vmem>>, vector<1x8x32xf32>
    %1 = vector.shape_cast %0 : vector<1x8x32xf32> to vector<8x32xf32>
    %c0_2 = arith.constant 0 : index
    %c0_3 = arith.constant 0 : index
    %c0_4 = arith.constant 0 : index
    %2 = vector.load %arg3[%c0_2, %c0_3, %c0_4] : memref<1x8x32xf32, #tpu.memory_space<vmem>>, vector<1x8x32xf32>
    %3 = vector.shape_cast %2 : vector<1x8x32xf32> to vector<8x32xf32>
    %c0_5 = arith.constant 0 : index
    %c0_6 = arith.constant 0 : index
    %4 = vector.load %arg4[%c0_5, %c0_6] : memref<32x16xf32, #tpu.memory_space<vmem>>, vector<32x16xf32>
    %cst = arith.constant dense<0.000000e+00> : vector<8x16xf32>
    %5 = tpu.matmul %1, %4, %cst {dimension_numbers = #tpu.dot_dimension_numbers<[1], [0], [0], [1], [0, 0, 1, 1], [], []>} : vector<8x32xf32>, vector<32x16xf32>, vector<8x16xf32> -> vector<8x16xf32>
    %cst_7 = arith.constant 0.353553385 : f32
    %6 = vector.broadcast %cst_7 : f32 to vector<8x16xf32>
    %7 = arith.mulf %5, %6 : vector<8x16xf32>
    %c0_8 = arith.constant 0 : index
    %c0_9 = arith.constant 0 : index
    %8 = vector.load %arg5[%c0_8, %c0_9] : memref<32x32xf32, #tpu.memory_space<vmem>>, vector<32x32xf32>
    %cst_10 = arith.constant dense<0.000000e+00> : vector<8x32xf32>
    %9 = tpu.matmul %3, %8, %cst_10 {dimension_numbers = #tpu.dot_dimension_numbers<[1], [0], [0], [1], [0, 0, 1, 1], [], []>} : vector<8x32xf32>, vector<32x32xf32>, vector<8x32xf32> -> vector<8x32xf32>
    %10 = vector.extract_strided_slice %9 {offsets = [0, 0], sizes = [8, 16], strides = [1, 1]} : vector<8x32xf32> to vector<8x16xf32>
    %11 = vector.extract_strided_slice %9 {offsets = [0, 16], sizes = [8, 16], strides = [1, 1]} : vector<8x32xf32> to vector<8x16xf32>
    %12 = vector.extract_strided_slice %7 {offsets = [0, 0], sizes = [8, 8], strides = [1, 1]} : vector<8x16xf32> to vector<8x8xf32>
    %13 = vector.extract_strided_slice %10 {offsets = [0, 0], sizes = [8, 8], strides = [1, 1]} : vector<8x16xf32> to vector<8x8xf32>
    %14 = vector.extract_strided_slice %11 {offsets = [0, 0], sizes = [8, 8], strides = [1, 1]} : vector<8x16xf32> to vector<8x8xf32>
    %cst_11 = arith.constant dense<0.000000e+00> : vector<8x8xf32>
    %15 = tpu.matmul %12, %13, %cst_11 {dimension_numbers = #tpu.dot_dimension_numbers<[1], [1], [0], [0], [0, 0, 1, 0], [], []>} : vector<8x8xf32>, vector<8x8xf32>, vector<8x8xf32> -> vector<8x8xf32>
    %cst_12 = arith.constant dense<0xFF800000> : vector<8xf32>
    %16 = vector.multi_reduction <maximumf>, %15, %cst_12 [1] : vector<8x8xf32> to vector<8xf32>
    %17 = vector.shape_cast %16 : vector<8xf32> to vector<8x1xf32>
    %18 = vector.broadcast %17 : vector<8x1xf32> to vector<8x8xf32>
    %19 = arith.subf %15, %18 : vector<8x8xf32>
    %20 = math.exp %19 : vector<8x8xf32>
    %cst_13 = arith.constant dense<0.000000e+00> : vector<8xf32>
    %21 = vector.multi_reduction <add>, %20, %cst_13 [1] : vector<8x8xf32> to vector<8xf32>
    %22 = vector.shape_cast %21 : vector<8xf32> to vector<8x1xf32>
    %cst_14 = arith.constant dense<0.000000e+00> : vector<8x8xf32>
    %23 = tpu.matmul %20, %14, %cst_14 {dimension_numbers = #tpu.dot_dimension_numbers<[1], [0], [0], [1], [0, 0, 1, 1], [], []>} : vector<8x8xf32>, vector<8x8xf32>, vector<8x8xf32> -> vector<8x8xf32>
    %24 = tpu.reciprocal %22 : vector<8x1xf32> -> vector<8x1xf32>
    %25 = vector.broadcast %24 : vector<8x1xf32> to vector<8x8xf32>
    %26 = arith.mulf %23, %25 : vector<8x8xf32>
    %27 = vector.extract_strided_slice %7 {offsets = [0, 8], sizes = [8, 8], strides = [1, 1]} : vector<8x16xf32> to vector<8x8xf32>
    %28 = vector.extract_strided_slice %10 {offsets = [0, 8], sizes = [8, 8], strides = [1, 1]} : vector<8x16xf32> to vector<8x8xf32>
    %29 = vector.extract_strided_slice %11 {offsets = [0, 8], sizes = [8, 8], strides = [1, 1]} : vector<8x16xf32> to vector<8x8xf32>
    %cst_15 = arith.constant dense<0.000000e+00> : vector<8x8xf32>
    %30 = tpu.matmul %27, %28, %cst_15 {dimension_numbers = #tpu.dot_dimension_numbers<[1], [1], [0], [0], [0, 0, 1, 0], [], []>} : vector<8x8xf32>, vector<8x8xf32>, vector<8x8xf32> -> vector<8x8xf32>
    %cst_16 = arith.constant dense<0xFF800000> : vector<8xf32>
    %31 = vector.multi_reduction <maximumf>, %30, %cst_16 [1] : vector<8x8xf32> to vector<8xf32>
    %32 = vector.shape_cast %31 : vector<8xf32> to vector<8x1xf32>
    %33 = vector.broadcast %32 : vector<8x1xf32> to vector<8x8xf32>
    %34 = arith.subf %30, %33 : vector<8x8xf32>
    %35 = math.exp %34 : vector<8x8xf32>
    %cst_17 = arith.constant dense<0.000000e+00> : vector<8xf32>
    %36 = vector.multi_reduction <add>, %35, %cst_17 [1] : vector<8x8xf32> to vector<8xf32>
    %37 = vector.shape_cast %36 : vector<8xf32> to vector<8x1xf32>
    %cst_18 = arith.constant dense<0.000000e+00> : vector<8x8xf32>
    %38 = tpu.matmul %35, %29, %cst_18 {dimension_numbers = #tpu.dot_dimension_numbers<[1], [0], [0], [1], [0, 0, 1, 1], [], []>} : vector<8x8xf32>, vector<8x8xf32>, vector<8x8xf32> -> vector<8x8xf32>
    %39 = tpu.reciprocal %37 : vector<8x1xf32> -> vector<8x1xf32>
    %40 = vector.broadcast %39 : vector<8x1xf32> to vector<8x8xf32>
    %41 = arith.mulf %38, %40 : vector<8x8xf32>
    %42 = tpu.concatenate %26, %41 in 1 : vector<8x8xf32>, vector<8x8xf32> -> vector<8x16xf32>
    %c0_19 = arith.constant 0 : index
    %c0_20 = arith.constant 0 : index
    %43 = vector.load %arg6[%c0_19, %c0_20] : memref<16x32xf32, #tpu.memory_space<vmem>>, vector<16x32xf32>
    %cst_21 = arith.constant dense<0.000000e+00> : vector<8x32xf32>
    %44 = tpu.matmul %42, %43, %cst_21 {dimension_numbers = #tpu.dot_dimension_numbers<[1], [0], [0], [1], [0, 0, 1, 1], [], []>} : vector<8x16xf32>, vector<16x32xf32>, vector<8x32xf32> -> vector<8x32xf32>
    %c0_22 = arith.constant 0 : index
    %c0_23 = arith.constant 0 : index
    %c0_24 = arith.constant 0 : index
    %45 = vector.load %arg7[%c0_22, %c0_23, %c0_24] : memref<1x8x32xf32, #tpu.memory_space<vmem>>, vector<1x8x32xf32>
    %46 = vector.shape_cast %45 : vector<1x8x32xf32> to vector<8x32xf32>
    %47 = vector.shape_cast %44 : vector<8x32xf32> to vector<1x8x32xf32>
    tpu.vector_store %arg7[%c0_22, %c0_23, %c0_24], %47 {strides = array<i32>} : memref<1x8x32xf32, #tpu.memory_space<vmem>>, vector<1x8x32xf32>,
    return
  }
  func.func @transform_0(%arg0: i32, %arg1: i32) -> (i32, i32, i32) {
    %c0_i32 = arith.constant 0 : i32
    %c0_i32_0 = arith.constant 0 : i32
    return %arg0, %arg1, %c0_i32 : i32, i32, i32
  }
  func.func @transform_1(%arg0: i32, %arg1: i32) -> (i32, i32, i32) {
    %c0_i32 = arith.constant 0 : i32
    %c0_i32_0 = arith.constant 0 : i32
    %c0_i32_1 = arith.constant 0 : i32
    return %arg0, %c0_i32, %c0_i32_0 : i32, i32, i32
  }
  func.func @transform_2(%arg0: i32, %arg1: i32) -> (i32, i32) {
    %c0_i32 = arith.constant 0 : i32
    %c0_i32_0 = arith.constant 0 : i32
    %c0_i32_1 = arith.constant 0 : i32
    return %c0_i32, %c0_i32_0 : i32, i32
  }
  func.func @transform_3(%arg0: i32, %arg1: i32) -> (i32, i32) {
    %c0_i32 = arith.constant 0 : i32
    %c0_i32_0 = arith.constant 0 : i32
    %c0_i32_1 = arith.constant 0 : i32
    return %c0_i32, %c0_i32_0 : i32, i32
  }
  func.func @transform_4(%arg0: i32, %arg1: i32) -> (i32, i32) {
    %c0_i32 = arith.constant 0 : i32
    %c0_i32_0 = arith.constant 0 : i32
    %c0_i32_1 = arith.constant 0 : i32
    return %c0_i32, %c0_i32_0 : i32, i32
  }
  func.func @transform_5(%arg0: i32, %arg1: i32) -> (i32, i32, i32) {
    %c0_i32 = arith.constant 0 : i32
    %c0_i32_0 = arith.constant 0 : i32
    return %arg0, %arg1, %c0_i32 : i32, i32, i32
  }
}

</mosaic_0001>

<bundles_post_ra>
// kernel: tpu_custom_call.1
= control target key start
LH: loop header
LB: loop body
LE: loop exit
PB: predicated region body
PF: predicated region fallthrough
CT: control target
= control target key end

     0   :  { %10 = vsyncpa [#allocation3], 0  ;;  %s1154_s0 = inlined_call_operand.vmem [shape: f32[2,8,32], index: 0, kind: input, shape index: {}]   ;;  %s1155_s1 = inlined_call_operand.hbm [shape: f32[2,8,32], index: 1, kind: input, shape index: {}]   ;;  %s1156_s2 = inlined_call_operand.vmem [shape: f32[32,16], index: 2, kind: input, shape index: {}]   ;;  %s1157_s3 = inlined_call_operand.vmem [shape: f32[32,32], index: 3, kind: input, shape index: {}]   ;;  %s1158_s4 = inlined_call_operand.hbm [shape: f32[16,32], index: 4, kind: input, shape index: {}]   ;;  %s1159_s5 = inlined_call_operand.hbm [shape: f32[2,8,32], index: 5, kind: output, shape index: {}]  }
   0x1   :  { %12 = vsyncpa [#allocation3 + $0x1], 0 }
   0x2   :  { %13 = vsyncpa [#allocation6], 0 }
   0x3   :  { %14 = vsyncpa [#allocation4], 0 }
   0x4   :  { %16 = vsyncpa [#allocation4 + $0x1], 0  ;;  %s964_s18 = smov 0   ;;  %s966_s19 = smov 0  }
   0x5   :  { %s968_s20 = smov 0   ;;  %s970_s21 = smov 0  }
   0x6   :  { %s972_s22 = smov 0   ;;  %s974_s23 = smov 0  }
   0x7 LB: > { %s667_s24 = sadd.s32 4294967295, %s925_s23   ;;  %p669_p0 = scmp.ge.s32.totalorder %s925_s23, 1  ;;  %s925_s23 = sphi %s974_s23, %s22_s23   ;;  %s921_s22 = sphi %s972_s22, %s1170_s22   ;;  %s917_s21 = sphi %s970_s21, %s1169_s21   ;;  %s913_s20 = sphi %s968_s20, %s1168_s20   ;;  %s909_s19 = sphi %s966_s19, %s1167_s19   ;;  %s905_s18 = sphi %s964_s18, %s1166_s18  }
   0x8   : > { %p996_p1 = scmp.eq.s32.totalorder %s667_s24, 0  ;;  %p184_p2 = scmp.lt.s32.totalorder %s925_s23, 3 }
   0x9   : > { %s201_s28 = sshll.u32 %s1158_s4, 4  ;;  %s927_s30 = smov [#allocation5]   ;;  %s202_s28 = int_to_ptr.hbm [resolvable:$true] %s201_s28 }
   0xa   : > { %p1004_p3 = pnand %p669_p0, %p184_p2  ;;  %s203_s6 = sshll.u32 %s927_s30, 4  ;;  %s204_s6 = int_to_ptr.vmem [resolvable:$true] %s203_s6 }
   0xb   : > { %p671_p6 = scmp.ge.s32.totalorder %s925_s23, 2  ;;  %s928_s7 = smov 128  }
   0xc   : > { %p700_p4 = pneg %p1004_p3  ;;  %s929_s8 = smov 8  }
   0xd   : > { %s668_s9 = sadd.s32 4294967294, %s925_s23   ;;  %s34_s10 = sadd.s32 1, %s921_s22 }
   0xe   : > { %p701_p5 = pnand %p700_p4, %p996_p1  ;;  %s69_s11 = sadd.s32 1, %s913_s20 }
   0xf   : > { %p36_p7 = scmp.ge.s32.totalorder %s34_s10, 2  ;;  %p76_p8 = scmp.ne.s32.totalorder %s913_s20, %s909_s19 }
  0x10   : > { %703 = dma.hbm_to_vmem [thread:$0]  (!%p701_p5), %s202_s28, 256, %s204_s6, [#allocation6], %s928_s7, %s928_s7, %s929_s8  }
  0x11   : > { %p77_p9 = scmp.eq.s32.totalorder %s925_s23, 0  ;;  %p82_p10 = scmp.ne.s32.totalorder %s909_s19, %s905_s18 }
  0x12   : > { %s1172_s10 = smov (%p36_p7, %s34_s10), 0  ;;  %p171_p13 = scmp.eq.s32.totalorder %s667_s24, 1 }
  0x13   : > { %p1023_p11 = por %p77_p9, %p76_p8  ;;  %p1029_p12 = por %p996_p1, %p82_p10 }
  0x14   : > { %s66_s14 = ssub.s32 %s921_s22, %s1172_s10  ;;  %p177_p2 = scmp.eq.s32.totalorder %s668_s9, 1 }
  0x15   : > { %p67_p0 = scmp.eq.s32.totalorder %s66_s14, 0  ;;  %p1035_p4 = por %p171_p13, %p76_p8 }
  0x16   : > { %p713_p5 = scmp.lt.s32.totalorder %s925_s23, 2  ;;  %p1043_p7 = por %p177_p2, %p82_p10 }
  0x17   : > { %s1041_s16 = scalar_select %p67_p0, %s913_s20, %s69_s11  }
  0x18   : > { %s227_s26 = sand.u32 1, %s913_s20   ;;  %s673_s28 = sshll.u32 %s921_s22, 3 }
  0x19   : > { %s672_s27 = sshll.u32 %s227_s26, 3  ;;  %s235_s24 = scalar_lea.hbm %s1155_s1, %s673_s28 }
  0x1a   : > { %s231_s7 = scalar_lea.vmem [#allocation2], %s672_s27  ;;  %s237_s9 = sshll.u32 %s235_s24, 4  ;;  %s238_s9 = int_to_ptr.hbm [resolvable:$true] %s237_s9 }
  0x1b   : > { %s239_s8 = sshll.u32 %s231_s7, 4  ;;  %p705_p8 = pnand %p713_p5, %p1023_p11  ;;  %s240_s8 = int_to_ptr.vmem [resolvable:$true] %s239_s8 }
  0x1c   : > { %s228_s11 = scalar_lea.sflag [#allocation3], %s227_s26  ;;  %248 = sbr.rel (%p1004_p3) target bundleno = 1067 (0x42b), region = 40 }
  0x1d   : > { %707 = dma.hbm_to_vmem [thread:$0]  (!%p705_p8), %s238_s9, 128, %s240_s8, %s228_s11  }
  0x1e   : > { %s1057_s14 = sand.u32 (!%p1004_p3), 1, %s909_s19  }
  0x1f   : > { %s675_s28 = sshll.u32 (!%p1004_p3), %s1057_s14, 3  ;;  %s251_s27 = scalar_lea.sflag (!%p1004_p3), [#allocation3], %s1057_s14 }
  0x20   : > { %s254_s30 = scalar_lea.vmem (!%p1004_p3), [#allocation2], %s675_s28 }
  0x21   : > { %892 = dma.done.wait (%p1029_p12), %s251_s27, 128  }
  0x22   : > { %894 = vsyncadd (%p1029_p12), %s251_s27, 4294967168 }
  0x23   : > { %896 = dma.done.wait (%p996_p1), [#allocation6], 256  }
  0x24   : > { %898 = vsyncadd (%p996_p1), [#allocation6], 4294967040  ;;  %p294_p3 = scmp.lt.s32.totalorder %s917_s21, 1  ;;  %v335_v0 = vld [vmem:[%s1157_s3 + $0x18] sm:$0xff]  ;;  %v334_v2 = vld [vmem:[%s1157_s3 + $0x10] sm:$0xff]  ;;  %vm307_vm0 = vcmask 261120  }
  0x25   : > { %v306_v1 = vld [vmem:[%s1156_s2 + $0x18] sm:$0xff]  ;;  %351 = vmatpush.msra.mxu1 %v335_v0  ;;  %v305_v3 = vld [vmem:[%s1156_s2 + $0x10] sm:$0xff]  ;;  %v333_v4 = vld [vmem:[%s1157_s3 + $0x8] sm:$0xff]  ;;  %vm359_vm1 = vcmask 64512   ;;  %s932_s11 = smov 104   ;;  %s933_s27 = smov 8  }
  0x26   : > { %s295_s29 = scalar_select %p294_p3, %s917_s21, 1  ;;  %323 = vmatpush.msra.mxu0 %v306_v1  ;;  %v304_v5 = vld [vmem:[%s1156_s2 + $0x8] sm:$0xff]  ;;  %v332_v6 = vld [vmem:[%s1157_s3] sm:$0xff]  ;;  %v520_v32 = vld [vmem:[#allocation5 + $0x8] sm:$0xff]  ;;  %vm521_vm10 = vcmask 130048  }
  0x27   : > { %352 = vmatpush.msra.mxu1 %v334_v2  ;;  %v303_v7 = vld [vmem:[%s1156_s2] sm:$0xff]  ;;  %v519_v47 = vld [vmem:[#allocation5] sm:$0xff]  ;;  %s547_s25 = scalar_lea.sflag [#allocation4], %s1057_s14 }
  0x28   : > { %s678_s12 = sshll.u32 %s295_s29, 3  ;;  %324 = vmatpush.msra.mxu0 %v305_v3  ;;  %v302_v8 = vld [vmem:[%s254_s30] sm:$0xff]  ;;  %s931_s30 = smov 112  }
  0x29   : > { %s300_s7 = scalar_lea.vmem %s1154_s0, %s678_s12  ;;  %353 = vmatpush.msra.mxu1 %v333_v4  ;;  %s930_s12 = smov 120  }
  0x2a   : > { %325 = vmatpush.msra.mxu0 %v304_v5  ;;  %v301_v9 = vld [vmem:[%s300_s7] sm:$0xff]  ;;  %s689_s29 = sshll.u32 %s917_s21, 3  ;;  %s293_s7 = scalar_lea.vmem [#allocation7], %s675_s28 }
  0x2b   : > { %354 = vmatpush.msra.mxu1 %v332_v6  ;;  %s558_s24 = scalar_lea.hbm %s1159_s5, %s689_s29  ;;  %s560_s13 = sshll.u32 %s293_s7, 4  ;;  %s561_s13 = int_to_ptr.vmem [resolvable:$true] %s560_s13 }
  0x2c   : > { %326 = vmatpush.msra.mxu0 %v303_v7  ;;  %680 = vmatmul.msk.f32.vlgmr.msra.gmra.mxu1 %vm307_vm0, %v302_v8  ;;  %s562_s8 = sshll.u32 %s558_s24, 4  ;;  %s563_s8 = int_to_ptr.hbm [resolvable:$true] %s562_s8 }
  0x2d   : > { %679 = vmatmul.msk.f32.vlgmr.msra.gmra.mxu0 %vm307_vm0, %v301_v9  ;;  %s853_s9 = sshra.s32 %s563_s8, 4  ;;  %s854_s9 = int_to_ptr.hbm [resolvable:$true] %s853_s9 }
  0x2e   : > { %539 = vmatpush.msrb.mxu0 %v520_v32  ;;  %p860_p11 = scmp.lt.s32.totalorder %s854_s9, %s1159_s5 }
  0x30   : > { %540 = vmatpush.msrb.mxu0 %v519_v47 }
  0xa9   : > { %v356_v10 = vpop.f32.mrf.mxu1 }
  0xaa   : > { %v328_v11 = vpop.f32.mrf.mxu0  ;;  %438 = vrot.lane.b32.xlu1 %v356_v10, %s930_s12  ;;  %681 = vmatpush.xpose.msk.msra.mxu2 %vm359_vm1, %v356_v10 }
  0xab   : > { %v331_v12 = vmul.f32 0.35355338, %v328_v11 }
  0xad   : > { %682 = vmatmul.msk.f32.vlgmr.msra.gmra.mxu2 %vm359_vm1, %v331_v12 }
  0xb2   : > { %436 = vrot.lane.b32.xlu1 %v331_v12, %s930_s12  ;;  %s855_s12 = scalar_lea.hbm %s854_s9, 8 }
  0xb3   : > { %p856_p1 = scmp.ne.s32.totalorder %s854_s9, %s855_s12 }
  0xb5   : > { %p857_p9 = pnand %p856_p1, %p1035_p4 }
  0xb7   : > { %p858_p10 = pneg %p857_p9 }
 0x11c   : > { %v439_v20 = vpop.permute.xlu1 %438 }
 0x124   : > { %v437_v22 = vpop.permute.xlu1 %436 }
 0x130   : > { %v383_v13 = vpop.f32.mrf.mxu2 }
 0x131   : > { %v386_v14 = vsel %vm359_vm1, %v383_v13, -inf }
 0x132   : > { %387 = vmax.xlane.f32.xlu0 %v386_v14 }
 0x146   : > { %395 = vrot.lane.b32.xlu0 %v356_v10, %s931_s30 }
 0x1a5   : > { %v388_v15 = vpop.xlane.xlu0 %387 }
 0x1a6   : > { %v389_v16 = vsub.f32 %v383_v13, %v388_v15 }
 0x1a8   : > { %v390_v17 = vmul.f32 1.442695, %v389_v16 }
 0x1aa   : > { %771 = vpow2.f32 %v390_v17 }
 0x1b0   : > { %v772_v18 = vpop.eup %771 }
 0x1b1   : > { %v392_v19 = vsel %vm359_vm1, %v772_v18, 0.0 }
 0x1b2   : > { %393 = vadd.xlane.f32.xlu0 %v392_v19 }
 0x1b8   : > { %v396_v21 = vpop.permute.xlu0 %395 }
 0x1b9   : > { %416 = vmatpush.msra.mxu3 %v396_v21 }
 0x1ba   : > { %683 = vmatmul.msk.f32.vlgmr.msra.gmra.mxu3 %vm359_vm1, %v772_v18 }
 0x1bb   : > { %684 = vmatpush.xpose.msk.msrb.mxu3 %vm359_vm1, %v439_v20 }
 0x1c2   : > { %685 = vmatmul.msk.f32.vlgmr.msrb.gmra.mxu3 %vm359_vm1, %v437_v22 }
 0x225   : > { %v394_v46 = vpop.xlane.xlu0 %393 }
 0x226   : > { %v432_v53 = vand.u32 2147483648, %v394_v46  ;;  %vm426_vm7 = vweird.f32 %v394_v46  ;;  %v430_v54 = vand.u32 2147483647, %v394_v46 }
 0x228   : > { %v433_v56 = vor.u32 1.1754944e-38, %v432_v53  ;;  %vm431_vm9 = vcmp.eq.f32.partialorder %v430_v54, 8.507059e+37 }
 0x23d   : > { %v418_v23 = vpop.f32.mrf.mxu3 }
 0x245   : > { %v461_v24 = vpop.f32.mrf.mxu3 }
 0x246   : > { %v464_v25 = vsel %vm359_vm1, %v461_v24, -inf }
 0x247   : > { %465 = vmax.xlane.f32.xlu2 %v464_v25 }
 0x25f   : > { %473 = vrot.lane.b32.xlu2 %v356_v10, %s932_s11  ;;  %s859_s11 = scalar_lea.hbm %s1159_s5, 16 }
 0x260   : > { %p861_p12 = scmp.lt.s32.totalorder %s859_s11, %s855_s12 }
 0x262   : > { %p862_p13 = por %p861_p12, %p860_p11 }
 0x264   : > { %p863_p0 = pnand %p862_p13, %p858_p10 }
 0x2ba   : > { %v466_v26 = vpop.xlane.xlu2 %465 }
 0x2bb   : > { %v467_v27 = vsub.f32 %v461_v24, %v466_v26 }
 0x2bd   : > { %v468_v28 = vmul.f32 1.442695, %v467_v27 }
 0x2bf   : > { %773 = vpow2.f32 %v468_v28 }
 0x2c2   : > { %v474_v29 = vpop.permute.xlu2 %473 }
 0x2c3   : > { %494 = vmatpush.msrb.mxu2 %v474_v29 }
 0x2c5   : > { %v774_v30 = vpop.eup %773 }
 0x2c6   : > { %686 = vmatmul.msk.f32.vlgmr.msrb.gmra.mxu2 %vm359_vm1, %v774_v30  ;;  %v470_v31 = vsel %vm359_vm1, %v774_v30, 0.0 }
 0x2c7   : > { %471 = vadd.xlane.f32.xlu1 %v470_v31 }
 0x33a   : > { %v472_v33 = vpop.xlane.xlu1 %471 }
 0x33b   : > { %775 = vrcp.f32 %v472_v33  ;;  %v510_v37 = vand.u32 2147483648, %v472_v33  ;;  %v508_v39 = vand.u32 2147483647, %v472_v33  ;;  %vm504_vm3 = vweird.f32 %v472_v33 }
 0x33c   : > { %777 = vrcp.f32 %v394_v46 }
 0x33d   : > { %v511_v41 = vor.u32 1.1754944e-38, %v510_v37  ;;  %vm509_vm5 = vcmp.eq.f32.partialorder %v508_v39, 8.507059e+37 }
 0x341   : > { %v776_v34 = vpop.eup %775 }
 0x342   : > { %v500_v35 = vmul.f32 %v776_v34, %v472_v33  ;;  %vm505_vm2 = vweird.f32 %v776_v34  ;;  %v778_v48 = vpop.eup %777 }
 0x343   : > { %vm506_vm4 = vmor %vm504_vm3, %vm505_vm2  ;;  %v422_v49 = vmul.f32 %v778_v48, %v394_v46  ;;  %vm427_vm6 = vweird.f32 %v778_v48 }
 0x344   : > { %v501_v36 = vsub.f32 1.0, %v500_v35  ;;  %vm428_vm8 = vmor %vm426_vm7, %vm427_vm6 }
 0x345   : > { %v423_v50 = vsub.f32 1.0, %v422_v49 }
 0x346   : > { %v502_v38 = vmul.f32 %v776_v34, %v501_v36 }
 0x347   : > { %v424_v51 = vmul.f32 %v778_v48, %v423_v50 }
 0x348   : > { %v503_v40 = vadd.f32 %v776_v34, %v502_v38 }
 0x349   : > { %v496_v43 = vpop.f32.mrf.mxu2  ;;  %v425_v52 = vadd.f32 %v778_v48, %v424_v51 }
 0x34a   : > { %v507_v42 = vsel %vm506_vm4, %v776_v34, %v503_v40 }
 0x34b   : > { %v512_v44 = vsel %vm509_vm5, %v511_v41, %v507_v42  ;;  %v429_v55 = vsel %vm428_vm8, %v778_v48, %v425_v52 }
 0x34c   : > { %v513_v45 = vmul.f32 %v512_v44, %v496_v43  ;;  %v434_v57 = vsel %vm431_vm9, %v433_v56, %v429_v55 }
 0x34d   : > { %v435_v58 = vmul.f32 %v434_v57, %v418_v23 }
 0x34e   : > { %515 = vrot.lane.b32.xlu2 %v513_v45, %s933_s27 }
 0x3a8   : > { %v516_v59 = vpop.permute.xlu2 %515 }
 0x3a9   : > { %v518_v60 = vsel %vm359_vm1, %v435_v58, %v516_v59 }
 0x3aa   : > { %687 = vmatmul.msk.f32.vlgmr.msrb.gmra.mxu0 %vm521_vm10, %v518_v60 }
 0x427   : > { %v542_v61 = vpop.f32.mrf.mxu0 }
 0x428   : > { %545 = vst.msk [vmem:[%s293_s7] sm:$0xff] %vm307_vm0, %v542_v61 }
 0x429   : > { %866 = shalt.err (!%p863_p0)
}
 0x42a   : > { %698 = dma.vmem_to_hbm [thread:$0]  (%p1035_p4), %s561_s13, 128, %s563_s8, %s547_s25  }
 0x42b PF: > { %s574_s14 = sand.u32 1, %s905_s18   ;;  %p709_p2 = pnand %p671_p6, %p1043_p7 }
 0x42c   : > { %s575_s29 = scalar_lea.sflag [#allocation4], %s574_s14 }
 0x42d   : > { %p710_p5 = pneg %p709_p2 }
 0x42f   : > { %900 = dma.done.wait (%p710_p5), %s575_s29, 128  }
 0x430   : > { %902 = vsyncadd (%p710_p5), %s575_s29, 4294967168  ;;  %s22_s23 = sadd.s32 1, %s925_s23   ;;  %s1166_s18 = smov %s909_s19 }
 0x431   : > { %p19_p8 = scmp.ge.s32.totalorder %s22_s23, 4   ;;  %s1167_s19 = smov %s913_s20 }
 0x432   : > { %s1168_s20 = smov %s1041_s16  ;;  %s1169_s21 = smov %s921_s22 }
 0x433   : > { %s1170_s22 = smov %s1172_s10  ;;  %21 = sbr.rel (!%p19_p8) target bundleno = 7 (0x7), region = 92 }
 0x438   :  { %581 = vsyncpa [#allocation3], 1 }
 0x439   :  { %583 = vsyncpa [#allocation3 + $0x1], 1 }
 0x43a   :  { %584 = vsyncpa [#allocation6], 1 }
 0x43b   :  { %585 = vsyncpa [#allocation4], 1 }
 0x43c   :  { %587 = vsyncpa [#allocation4 + $0x1], 1 }

</bundles_post_ra>
